<compile_context>
chip_gen: v7x
topology: tpu7x:2x2x1
jax: 0.10.0
libtpu: 0.0.40
codegen_flags: <defaults>
</compile_context>

<pallas_src>
import jax
import jax.numpy as jnp
from jax.experimental import pallas as pl
from jax.experimental.pallas import tpu as pltpu

HIDDEN = 128


def _round_up(x, m):
    return ((x + m - 1) // m) * m


def _critic_kernel(s_ref, a_ref,
                   w1_ref, b1_ref,
                   w2x_ref, w2a_ref, b2_ref,
                   w3_ref, b3_ref,
                   out_ref):
    # Feature-major layout: s_ref (state_dim, TB), a_ref (act_dim, TB),
    # out_ref (1, TB). Batch is on lanes everywhere.

    # fc1 + relu:  h1 = relu(W1 @ s + b1)           -> (HIDDEN, TB)
    h1 = jnp.dot(w1_ref[...], s_ref[...], preferred_element_type=jnp.float32)
    h1 = jnp.maximum(h1 + b1_ref[...], 0.0)

    # fc2 on concat([h1, action]) + relu, split algebraically:
    #   W2 @ cat(h1, a) == W2x @ h1 + W2a @ a
    h2 = (jnp.dot(w2x_ref[...], h1, preferred_element_type=jnp.float32)
          + jnp.dot(w2a_ref[...], a_ref[...],
                    preferred_element_type=jnp.float32)
          + b2_ref[...])
    h2 = jnp.maximum(h2, 0.0)

    # fc3: 128 -> 1 as a VPU multiply + sublane reduction (keeps MXU free,
    # result is lane-dense (1, TB)); scalar bias comes from SMEM.
    out_ref[...] = (jnp.sum(h2 * w3_ref[...], axis=0, keepdims=True)
                    + b3_ref[0, 0])


def critic_forward(state, action, params, *, tile_b=None):
    """state: (B, state_dim) f32, action: (B, act_dim) f32 -> (B, 1) f32."""
    w1t, b1, w2xt, w2at, b2, w3col, b3 = params
    batch, state_dim = state.shape
    act_dim = action.shape[1]

    # Batch tile: multiple of 128 (MXU/lane width); cap at 512 so the
    # double-buffered tiles stay tiny even on v7x's 64 MiB VMEM.
    if tile_b is None:
        tile_b = min(512, _round_up(batch, 128))
    b_pad = _round_up(batch, tile_b)
    grid = (b_pad // tile_b,)

    def pad_rows(x):
        if x.shape[0] == b_pad:
            return x
        return jnp.pad(x, ((0, b_pad - x.shape[0]), (0, 0)))

    # Layout plumbing in the wrapper: feature-major so batch sits on lanes.
    state_t = pad_rows(state).T     # (state_dim, b_pad)
    action_t = pad_rows(action).T   # (act_dim,  b_pad)

    # Streamed activations get a moving block index; weights/biases get a
    # constant index_map so they are DMA'd once and stay resident in VMEM.
    in_specs = [
        pl.BlockSpec((state_dim, tile_b), lambda i: (0, i)),   # state (streamed)
        pl.BlockSpec((act_dim, tile_b), lambda i: (0, i)),     # action (streamed)
        pl.BlockSpec((HIDDEN, state_dim), lambda i: (0, 0)),   # W1^T      (resident)
        pl.BlockSpec((HIDDEN, 1), lambda i: (0, 0)),           # b1 column (resident)
        pl.BlockSpec((HIDDEN, HIDDEN), lambda i: (0, 0)),      # W2x       (resident)
        pl.BlockSpec((HIDDEN, act_dim), lambda i: (0, 0)),     # W2a       (resident)
        pl.BlockSpec((HIDDEN, 1), lambda i: (0, 0)),           # b2 column (resident)
        pl.BlockSpec((HIDDEN, 1), lambda i: (0, 0)),           # w3 column (resident)
        pl.BlockSpec(memory_space=pltpu.MemorySpace.SMEM),     # b3 scalar in SMEM
    ]
    out_specs = pl.BlockSpec((1, tile_b), lambda i: (0, i))    # lane-dense output

    out_t = pl.pallas_call(
        _critic_kernel,
        out_shape=jax.ShapeDtypeStruct((1, b_pad), jnp.float32),
        grid=grid,
        in_specs=in_specs,
        out_specs=out_specs,
        compiler_params=pltpu.CompilerParams(
            dimension_semantics=("parallel",)),   # megacore on v7x
    )(state_t, action_t, w1t, b1, w2xt, w2at, b2, w3col, b3)

    return out_t[0, :batch].reshape(batch, 1)


def init_critic_params(key, state_dim, act_dim):
    """Deterministic init mimicking PyTorch Linear's U(-1/sqrt(fan_in), +1/sqrt(fan_in)).

    Weights are stored in the feature-major orientation the kernel consumes:
      w1t  : (128, state_dim)      == fc1.weight
      b1   : (128, 1)
      w2xt : (128, 128)            == fc2.weight[:, :128]
      w2at : (128, act_dim)        == fc2.weight[:, 128:]
      b2   : (128, 1)
      w3col: (128, 1)              == fc3.weight.T
      b3   : (1, 1)
    """
    def uniform(key, shape, fan_in):
        bound = 1.0 / jnp.sqrt(jnp.float32(fan_in))
        return jax.random.uniform(key, shape, jnp.float32, -bound, bound)

    k1w, k1b, k2w, k2b, k3w, k3b = jax.random.split(key, 6)
    w1t = uniform(k1w, (HIDDEN, state_dim), state_dim)
    b1 = uniform(k1b, (HIDDEN, 1), state_dim)

    fan2 = HIDDEN + act_dim
    w2 = uniform(k2w, (HIDDEN, fan2), fan2)
    w2xt, w2at = w2[:, :HIDDEN], w2[:, HIDDEN:]
    b2 = uniform(k2b, (HIDDEN, 1), fan2)

    w3col = uniform(k3w, (HIDDEN, 1), HIDDEN)
    b3 = uniform(k3b, (1, 1), HIDDEN)
    return (w1t, b1, w2xt, w2at, b2, w3col, b3)


def critic_reference(state, action, params):
    """Plain-JAX reference matching the PyTorch forward pass."""
    w1t, b1, w2xt, w2at, b2, w3col, b3 = params
    h1 = jax.nn.relu(state @ w1t.T + b1[:, 0])
    h2 = jax.nn.relu(h1 @ w2xt.T + action @ w2at.T + b2[:, 0])
    return h2 @ w3col + b3[0, 0]


if __name__ == "__main__":
    batch, state_dim, act_dim = 8, 16, 8

    key = jax.random.PRNGKey(0)
    k_state, k_action, k_params = jax.random.split(key, 3)

    state = jax.random.normal(k_state, (batch, state_dim), jnp.float32)
    action = jax.random.normal(k_action, (batch, act_dim), jnp.float32)
    params = init_critic_params(k_params, state_dim, act_dim)

    out = critic_forward(state, action, params)
    out = jax.block_until_ready(out)

    ref = critic_reference(state, action, params)
    assert out.shape == (batch, 1), out.shape
    assert jnp.allclose(out, ref, atol=1e-4, rtol=1e-4), (out, ref)

    print("KERNEL_OK")
</pallas_src>

<mosaic_0001>
module attributes {stable_mosaic.version = 11 : i64} {
  func.func @_critic_kernel(%arg0: i32, %arg1: memref<16x128xf32, #tpu.memory_space<vmem>>, %arg2: memref<8x128xf32, #tpu.memory_space<vmem>>, %arg3: memref<128x16xf32, #tpu.memory_space<vmem>>, %arg4: memref<128x1xf32, #tpu.memory_space<vmem>>, %arg5: memref<128x128xf32, #tpu.memory_space<vmem>>, %arg6: memref<128x8xf32, #tpu.memory_space<vmem>>, %arg7: memref<128x1xf32, #tpu.memory_space<vmem>>, %arg8: memref<128x1xf32, #tpu.memory_space<vmem>>, %arg9: memref<1x1xf32, #tpu.memory_space<smem>>, %arg10: memref<1x128xf32, #tpu.memory_space<vmem>>) attributes {dimension_semantics = [#tpu.dimension_semantics<parallel>], iteration_bounds = array<i64: 1>, scalar_prefetch = 0 : i64, scratch_operands = 0 : i64, tpu.core_type = #tpu.core_type<tc>, window_params = [{transform_indices = @transform_0, window_bounds = array<i64: 16, 128>}, {transform_indices = @transform_1, window_bounds = array<i64: 8, 128>}, {pipeline_mode = #tpu.pipeline_mode<synchronous>, transform_indices = @transform_2, window_bounds = array<i64: 128, 16>}, {pipeline_mode = #tpu.pipeline_mode<synchronous>, transform_indices = @transform_3, window_bounds = array<i64: 128, 1>}, {pipeline_mode = #tpu.pipeline_mode<synchronous>, transform_indices = @transform_4, window_bounds = array<i64: 128, 128>}, {pipeline_mode = #tpu.pipeline_mode<synchronous>, transform_indices = @transform_5, window_bounds = array<i64: 128, 8>}, {pipeline_mode = #tpu.pipeline_mode<synchronous>, transform_indices = @transform_6, window_bounds = array<i64: 128, 1>}, {pipeline_mode = #tpu.pipeline_mode<synchronous>, transform_indices = @transform_7, window_bounds = array<i64: 128, 1>}, {transform_indices = @transform_8, window_bounds = array<i64: 1, 1>}, {transform_indices = @transform_9, window_bounds = array<i64: 1, 128>}]} {
    %c0 = arith.constant 0 : index
    %c0_0 = arith.constant 0 : index
    %0 = vector.load %arg3[%c0, %c0_0] : memref<128x16xf32, #tpu.memory_space<vmem>>, vector<128x16xf32>
    %c0_1 = arith.constant 0 : index
    %c0_2 = arith.constant 0 : index
    %1 = vector.load %arg1[%c0_1, %c0_2] : memref<16x128xf32, #tpu.memory_space<vmem>>, vector<16x128xf32>
    %cst = arith.constant dense<0.000000e+00> : vector<128x128xf32>
    %2 = tpu.matmul %0, %1, %cst {dimension_numbers = #tpu.dot_dimension_numbers<[1], [0], [0], [1], [0, 0, 1, 1], [], []>} : vector<128x16xf32>, vector<16x128xf32>, vector<128x128xf32> -> vector<128x128xf32>
    %c0_3 = arith.constant 0 : index
    %c0_4 = arith.constant 0 : index
    %3 = vector.load %arg4[%c0_3, %c0_4] : memref<128x1xf32, #tpu.memory_space<vmem>>, vector<128x1xf32>
    %4 = vector.broadcast %3 : vector<128x1xf32> to vector<128x128xf32>
    %5 = arith.addf %2, %4 : vector<128x128xf32>
    %cst_5 = arith.constant 0.000000e+00 : f32
    %6 = vector.broadcast %cst_5 : f32 to vector<128x128xf32>
    %7 = arith.maximumf %5, %6 : vector<128x128xf32>
    %c0_6 = arith.constant 0 : index
    %c0_7 = arith.constant 0 : index
    %8 = vector.load %arg5[%c0_6, %c0_7] : memref<128x128xf32, #tpu.memory_space<vmem>>, vector<128x128xf32>
    %cst_8 = arith.constant dense<0.000000e+00> : vector<128x128xf32>
    %9 = tpu.matmul %8, %7, %cst_8 {dimension_numbers = #tpu.dot_dimension_numbers<[1], [0], [0], [1], [0, 0, 1, 1], [], []>} : vector<128x128xf32>, vector<128x128xf32>, vector<128x128xf32> -> vector<128x128xf32>
    %c0_9 = arith.constant 0 : index
    %c0_10 = arith.constant 0 : index
    %10 = vector.load %arg6[%c0_9, %c0_10] : memref<128x8xf32, #tpu.memory_space<vmem>>, vector<128x8xf32>
    %c0_11 = arith.constant 0 : index
    %c0_12 = arith.constant 0 : index
    %11 = vector.load %arg2[%c0_11, %c0_12] : memref<8x128xf32, #tpu.memory_space<vmem>>, vector<8x128xf32>
    %cst_13 = arith.constant dense<0.000000e+00> : vector<128x128xf32>
    %12 = tpu.matmul %10, %11, %cst_13 {dimension_numbers = #tpu.dot_dimension_numbers<[1], [0], [0], [1], [0, 0, 1, 1], [], []>} : vector<128x8xf32>, vector<8x128xf32>, vector<128x128xf32> -> vector<128x128xf32>
    %13 = arith.addf %9, %12 : vector<128x128xf32>
    %c0_14 = arith.constant 0 : index
    %c0_15 = arith.constant 0 : index
    %14 = vector.load %arg7[%c0_14, %c0_15] : memref<128x1xf32, #tpu.memory_space<vmem>>, vector<128x1xf32>
    %15 = vector.broadcast %14 : vector<128x1xf32> to vector<128x128xf32>
    %16 = arith.addf %13, %15 : vector<128x128xf32>
    %cst_16 = arith.constant 0.000000e+00 : f32
    %17 = vector.broadcast %cst_16 : f32 to vector<128x128xf32>
    %18 = arith.maximumf %16, %17 : vector<128x128xf32>
    %c0_17 = arith.constant 0 : index
    %c0_18 = arith.constant 0 : index
    %19 = vector.load %arg8[%c0_17, %c0_18] : memref<128x1xf32, #tpu.memory_space<vmem>>, vector<128x1xf32>
    %20 = vector.broadcast %19 : vector<128x1xf32> to vector<128x128xf32>
    %21 = arith.mulf %18, %20 : vector<128x128xf32>
    %cst_19 = arith.constant dense<0.000000e+00> : vector<128xf32>
    %22 = vector.multi_reduction <add>, %21, %cst_19 [0] : vector<128x128xf32> to vector<128xf32>
    %23 = vector.shape_cast %22 : vector<128xf32> to vector<1x128xf32>
    %c0_20 = arith.constant 0 : index
    %c0_21 = arith.constant 0 : index
    %24 = memref.load %arg9[%c0_20, %c0_21] : memref<1x1xf32, #tpu.memory_space<smem>>
    %25 = vector.broadcast %24 : f32 to vector<1x128xf32>
    %26 = arith.addf %23, %25 : vector<1x128xf32>
    %c0_22 = arith.constant 0 : index
    %c0_23 = arith.constant 0 : index
    %27 = vector.load %arg10[%c0_22, %c0_23] : memref<1x128xf32, #tpu.memory_space<vmem>>, vector<1x128xf32>
    tpu.vector_store %arg10[%c0_22, %c0_23], %26 {strides = array<i32>} : memref<1x128xf32, #tpu.memory_space<vmem>>, vector<1x128xf32>,
    return
  }
  func.func @transform_0(%arg0: i32) -> (i32, i32) {
    %c0_i32 = arith.constant 0 : i32
    %c0_i32_0 = arith.constant 0 : i32
    return %c0_i32, %arg0 : i32, i32
  }
  func.func @transform_1(%arg0: i32) -> (i32, i32) {
    %c0_i32 = arith.constant 0 : i32
    %c0_i32_0 = arith.constant 0 : i32
    return %c0_i32, %arg0 : i32, i32
  }
  func.func @transform_2(%arg0: i32) -> (i32, i32) {
    %c0_i32 = arith.constant 0 : i32
    %c0_i32_0 = arith.constant 0 : i32
    %c0_i32_1 = arith.constant 0 : i32
    return %c0_i32, %c0_i32_0 : i32, i32
  }
  func.func @transform_3(%arg0: i32) -> (i32, i32) {
    %c0_i32 = arith.constant 0 : i32
    %c0_i32_0 = arith.constant 0 : i32
    %c0_i32_1 = arith.constant 0 : i32
    return %c0_i32, %c0_i32_0 : i32, i32
  }
  func.func @transform_4(%arg0: i32) -> (i32, i32) {
    %c0_i32 = arith.constant 0 : i32
    %c0_i32_0 = arith.constant 0 : i32
    %c0_i32_1 = arith.constant 0 : i32
    return %c0_i32, %c0_i32_0 : i32, i32
  }
  func.func @transform_5(%arg0: i32) -> (i32, i32) {
    %c0_i32 = arith.constant 0 : i32
    %c0_i32_0 = arith.constant 0 : i32
    %c0_i32_1 = arith.constant 0 : i32
    return %c0_i32, %c0_i32_0 : i32, i32
  }
  func.func @transform_6(%arg0: i32) -> (i32, i32) {
    %c0_i32 = arith.constant 0 : i32
    %c0_i32_0 = arith.constant 0 : i32
    %c0_i32_1 = arith.constant 0 : i32
    return %c0_i32, %c0_i32_0 : i32, i32
  }
  func.func @transform_7(%arg0: i32) -> (i32, i32) {
    %c0_i32 = arith.constant 0 : i32
    %c0_i32_0 = arith.constant 0 : i32
    %c0_i32_1 = arith.constant 0 : i32
    return %c0_i32, %c0_i32_0 : i32, i32
  }
  func.func @transform_8(%arg0: i32) -> (i32, i32) {
    %c0_i32 = arith.constant 0 : i32
    %c0_i32_0 = arith.constant 0 : i32
    %c0_i32_1 = arith.constant 0 : i32
    return %c0_i32, %c0_i32_0 : i32, i32
  }
  func.func @transform_9(%arg0: i32) -> (i32, i32) {
    %c0_i32 = arith.constant 0 : i32
    %c0_i32_0 = arith.constant 0 : i32
    return %c0_i32, %arg0 : i32, i32
  }
}

</mosaic_0001>

<bundles_post_ra>
// kernel: tpu_custom_call.1
= control target key start
LH: loop header
LB: loop body
LE: loop exit
PB: predicated region body
PF: predicated region fallthrough
CT: control target
= control target key end

     0   :  { %vm148_vm0 = vcmask 130048   ;;  %v1314_v3 = vmov 0   ;;  %s1716_s0 = inlined_call_operand.vmem [shape: f32[16,128], index: 0, kind: input, shape index: {}]   ;;  %s1717_s1 = inlined_call_operand.vmem [shape: f32[8,128], index: 1, kind: input, shape index: {}]   ;;  %s1718_s2 = inlined_call_operand.vmem [shape: f32[128,16], index: 2, kind: input, shape index: {}]   ;;  %s1719_s3 = inlined_call_operand.vmem [shape: f32[128,1], index: 3, kind: input, shape index: {}]   ;;  %s1720_s4 = inlined_call_operand.vmem [shape: f32[128,128], index: 4, kind: input, shape index: {}]   ;;  %s1721_s5 = inlined_call_operand.vmem [shape: f32[128,8], index: 5, kind: input, shape index: {}]   ;;  %s1722_s6 = inlined_call_operand.vmem [shape: f32[128,1], index: 6, kind: input, shape index: {}]   ;;  %s1723_s7 = inlined_call_operand.vmem [shape: f32[128,1], index: 7, kind: input, shape index: {}]   ;;  %s1724_s8 = inlined_call_operand.<no memory space> [shape: f32[1,1], index: 8, kind: input, shape index: {}]   ;;  %s1725_s9 = inlined_call_operand.hbm [shape: f32[1,128], index: 9, kind: output, shape index: {}]  }
   0x1   :  { %v54_v0 = vld [vmem:[%s1719_s3 + $0x10] sm:$0xff]  ;;  %v52_v1 = vld [vmem:[%s1719_s3] sm:$0xff]  ;;  %1289 = vset.pattern.permute.xlu1 %v1314_v3  ;;  %1288 = vset.pattern.permute.xlu0 %v1314_v3  ;;  %v51_v4 = vld [vmem:[%s1716_s0 + $0x8] sm:$0xff] }
   0x2   :  { %v50_v2 = vld [vmem:[%s1716_s0] sm:$0xff]  ;;  %80 = vperm.xlu1 %1289, %v54_v0   ;;  %70 = vperm.xlu0 %1288, %v52_v1   ;;  %v55_v7 = vld [vmem:[%s1719_s3 + $0x18] sm:$0xff]  ;;  %v53_v8 = vld [vmem:[%s1719_s3 + $0x8] sm:$0xff] }
   0x3   :  { %v1218_v5 = vpack.c.bf16 %v51_v4, %v50_v2  ;;  %v34_v6 = vld [vmem:[%s1718_s2] sm:$0xff]  ;;  %v35_v9 = vld [vmem:[%s1718_s2 + $0x8] sm:$0xff]  ;;  %v36_v10 = vld [vmem:[%s1718_s2 + $0x10] sm:$0xff] }
   0x4   :  { %1112 = vmatprep.mubr.msk.f32.mxu0 %vm148_vm0, %v34_v6  ;;  %v57_v11 = vld [vmem:[%s1719_s3 + $0x28] sm:$0xff]  ;;  %v56_v12 = vld [vmem:[%s1719_s3 + $0x20] sm:$0xff]  ;;  %v37_v13 = vld [vmem:[%s1718_s2 + $0x18] sm:$0xff] }
   0x5   :  { %1219 = vmatprep.subr.bf16.mxu0 %v1218_v5  ;;  %v38_v14 = vld [vmem:[%s1718_s2 + $0x20] sm:$0xff]  ;;  %v59_v15 = vld [vmem:[%s1719_s3 + $0x38] sm:$0xff]  ;;  %v58_v16 = vld [vmem:[%s1719_s3 + $0x30] sm:$0xff] }
   0x6   :  { %1221 = vmatpush3.bf16.msra.mxu0 %v1218_v5  ;;  %85 = vperm.xlu1 %1289, %v55_v7   ;;  %v39_v17 = vld [vmem:[%s1718_s2 + $0x28] sm:$0xff]  ;;  %v40_v18 = vld [vmem:[%s1718_s2 + $0x30] sm:$0xff]  ;;  %v60_v20 = vld [vmem:[%s1719_s3 + $0x40] sm:$0xff] }
   0x7   :  { %75 = vperm.xlu0 %1288, %v53_v8   ;;  %v61_v19 = vld [vmem:[%s1719_s3 + $0x48] sm:$0xff]  ;;  %v41_v21 = vld [vmem:[%s1718_s2 + $0x38] sm:$0xff]  ;;  %v42_v22 = vld [vmem:[%s1718_s2 + $0x40] sm:$0xff] }
   0x8   :  { %v63_v23 = vld [vmem:[%s1719_s3 + $0x58] sm:$0xff]  ;;  %v62_v24 = vld [vmem:[%s1719_s3 + $0x50] sm:$0xff]  ;;  %v43_v25 = vld [vmem:[%s1718_s2 + $0x48] sm:$0xff] }
   0x9   :  { %1113 = vmatmul.mubr.msk.f32.vlgmr.msra.gmra.mrb[0].mxu0 %vm148_vm0, %v35_v9  ;;  %v44_v26 = vld [vmem:[%s1718_s2 + $0x50] sm:$0xff] }
   0xa   :  { %1115 = vmatprep.mubr.msk.f32.mxu0 %vm148_vm0, %v36_v10  ;;  %95 = vperm.xlu1 %1289, %v57_v11  }
   0xb   :  { %90 = vperm.xlu0 %1288, %v56_v12  }
   0xd   :  { %1116 = vmatmul.mubr.msk.f32.gmra.mrb[2].mxu0 %vm148_vm0, %v37_v13 }
   0xe   :  { %1118 = vmatprep.mubr.msk.f32.mxu0 %vm148_vm0, %v38_v14  ;;  %105 = vperm.xlu1 %1289, %v59_v15  }
   0xf   :  { %100 = vperm.xlu0 %1288, %v58_v16  }
  0x11   :  { %1119 = vmatmul.mubr.msk.f32.gmra.mrb[4].mxu0 %vm148_vm0, %v39_v17 }
  0x12   :  { %1121 = vmatprep.mubr.msk.f32.mxu0 %vm148_vm0, %v40_v18  ;;  %115 = vperm.xlu1 %1289, %v61_v19  }
  0x13   :  { %110 = vperm.xlu0 %1288, %v60_v20  }
  0x15   :  { %1122 = vmatmul.mubr.msk.f32.gmra.mrb[6].mxu0 %vm148_vm0, %v41_v21 }
  0x16   :  { %1124 = vmatprep.mubr.msk.f32.mxu0 %vm148_vm0, %v42_v22  ;;  %125 = vperm.xlu1 %1289, %v63_v23  }
  0x17   :  { %120 = vperm.xlu0 %1288, %v62_v24  }
  0x18   :  { %15 = vsyncpa [#allocation4], 0  ;;  %v65_v27 = vld [vmem:[%s1719_s3 + $0x68] sm:$0xff]  ;;  %v64_v28 = vld [vmem:[%s1719_s3 + $0x60] sm:$0xff]  ;;  %vm391_vm1 = vcmask 64512   ;;  %s1315_s11 = smov [#allocation3]  }
  0x19   :  { %1125 = vmatmul.mubr.msk.f32.gmra.mrb[8].mxu0 %vm148_vm0, %v43_v25  ;;  %v45_v29 = vld [vmem:[%s1718_s2 + $0x58] sm:$0xff]  ;;  %v46_v30 = vld [vmem:[%s1718_s2 + $0x60] sm:$0xff]  ;;  %v66_v32 = vld [vmem:[%s1719_s3 + $0x70] sm:$0xff] }
  0x1a   :  { %1127 = vmatprep.mubr.msk.f32.mxu0 %vm148_vm0, %v44_v26  ;;  %135 = vperm.xlu1 %1289, %v65_v27   ;;  %v67_v31 = vld [vmem:[%s1719_s3 + $0x78] sm:$0xff]  ;;  %v47_v33 = vld [vmem:[%s1718_s2 + $0x68] sm:$0xff]  ;;  %v48_v34 = vld [vmem:[%s1718_s2 + $0x70] sm:$0xff]  ;;  %s1001_s3 = sshll.u32 %s1315_s11, 4  ;;  %s1002_s3 = int_to_ptr.vmem [resolvable:$true] %s1001_s3 }
  0x1b   :  { %130 = vperm.xlu0 %1288, %v64_v28   ;;  %v731_v35 = vld [vmem:[%s1722_s6 + $0x8] sm:$0xff]  ;;  %v730_v36 = vld [vmem:[%s1722_s6] sm:$0xff]  ;;  %v49_v37 = vld [vmem:[%s1718_s2 + $0x78] sm:$0xff]  ;;  %s1290_s12 = scalar_lea.vmem %s1002_s3, 16  ;;  %s1294_s13 = scalar_lea.vmem %s1002_s3, 32 }
  0x1c   :  { %v733_v38 = vld [vmem:[%s1722_s6 + $0x18] sm:$0xff]  ;;  %v732_v39 = vld [vmem:[%s1722_s6 + $0x10] sm:$0xff]  ;;  %v859_v40 = vld [vmem:[%s1723_s7 + $0x8] sm:$0xff]  ;;  %p1291_p0 = scmp.ne.s32.totalorder %s1002_s3, %s1290_s12  ;;  %p1295_p1 = scmp.lt.s32.totalorder %s1002_s3, %s1002_s3 }
  0x1d   :  { %1128 = vmatmul.mubr.msk.f32.gmra.mrb[10].mxu0 %vm148_vm0, %v45_v29  ;;  %v858_v41 = vld [vmem:[%s1723_s7] sm:$0xff]  ;;  %v860_v42 = vld [vmem:[%s1723_s7 + $0x10] sm:$0xff]  ;;  %v861_v44 = vld [vmem:[%s1723_s7 + $0x18] sm:$0xff]  ;;  %p1296_p2 = scmp.lt.s32.totalorder %s1294_s13, %s1290_s12 }
  0x1e   :  { %1130 = vmatprep.mubr.msk.f32.mxu0 %vm148_vm0, %v46_v30  ;;  %145 = vperm.xlu1 %1289, %v67_v31   ;;  %v734_v43 = vld [vmem:[%s1722_s6 + $0x20] sm:$0xff]  ;;  %v735_v45 = vld [vmem:[%s1722_s6 + $0x28] sm:$0xff]  ;;  %v736_v47 = vld [vmem:[%s1722_s6 + $0x30] sm:$0xff] }
  0x1f   :  { %140 = vperm.xlu0 %1288, %v66_v32   ;;  %v862_v46 = vld [vmem:[%s1723_s7 + $0x20] sm:$0xff]  ;;  %v863_v48 = vld [vmem:[%s1723_s7 + $0x28] sm:$0xff]  ;;  %v737_v49 = vld [vmem:[%s1722_s6 + $0x38] sm:$0xff]  ;;  %p1297_p3 = por %p1296_p2, %p1295_p1 }
  0x20   :  { %v864_v50 = vld [vmem:[%s1723_s7 + $0x30] sm:$0xff]  ;;  %v738_v51 = vld [vmem:[%s1722_s6 + $0x40] sm:$0xff]  ;;  %v865_v52 = vld [vmem:[%s1723_s7 + $0x38] sm:$0xff] }
  0x21   :  { %1131 = vmatmul.mubr.msk.f32.gmra.mrb[12].mxu0 %vm148_vm0, %v47_v33  ;;  %v739_v53 = vld [vmem:[%s1722_s6 + $0x48] sm:$0xff]  ;;  %v866_v54 = vld [vmem:[%s1723_s7 + $0x40] sm:$0xff]  ;;  %v740_v55 = vld [vmem:[%s1722_s6 + $0x50] sm:$0xff]  ;;  %p1298_p4 = pnand %p1297_p3, %p1291_p0 }
  0x22   :  { %1133 = vmatprep.mubr.msk.f32.mxu0 %vm148_vm0, %v48_v34  ;;  %753 = vperm.xlu1 %1289, %v731_v35   ;;  %v867_v56 = vld [vmem:[%s1723_s7 + $0x48] sm:$0xff]  ;;  %v741_v57 = vld [vmem:[%s1722_s6 + $0x58] sm:$0xff]  ;;  %v868_v58 = vld [vmem:[%s1723_s7 + $0x50] sm:$0xff] }
  0x23   :  { %748 = vperm.xlu0 %1288, %v730_v36   ;;  %v742_v59 = vld [vmem:[%s1722_s6 + $0x60] sm:$0xff]  ;;  %v869_v60 = vld [vmem:[%s1723_s7 + $0x58] sm:$0xff]  ;;  %v743_v61 = vld [vmem:[%s1722_s6 + $0x68] sm:$0xff] }
  0x24   :  { %v870_v62 = vld [vmem:[%s1723_s7 + $0x60] sm:$0xff]  ;;  %v744_v63 = vld [vmem:[%s1722_s6 + $0x70] sm:$0xff]  ;;  %v871_v0 = vld [vmem:[%s1723_s7 + $0x68] sm:$0xff] }
  0x25   :  { %1134 = vmatmul.mubr.msk.f32.gmra.mrb[14].mxu0 %vm148_vm0, %v49_v37  ;;  %v745_v1 = vld [vmem:[%s1722_s6 + $0x78] sm:$0xff]  ;;  %v872_v3 = vld [vmem:[%s1723_s7 + $0x70] sm:$0xff]  ;;  %v390_v4 = vld [vmem:[%s1717_s1] sm:$0xff] }
  0x26   :  { %763 = vperm.xlu1 %1289, %v733_v38   ;;  %v873_v2 = vld [vmem:[%s1723_s7 + $0x78] sm:$0xff]  ;;  %1136 = vmatprep.subr.mxu1 %v390_v4  ;;  %v374_v5 = vld [vmem:[%s1721_s5] sm:$0xff]  ;;  %v375_v6 = vld [vmem:[%s1721_s5 + $0x8] sm:$0xff] }
  0x27   :  { %758 = vperm.xlu0 %1288, %v732_v39   ;;  %1137 = vmatpush3.msra.mxu1 %v390_v4  ;;  %v376_v7 = vld [vmem:[%s1721_s5 + $0x10] sm:$0xff]  ;;  %v377_v8 = vld [vmem:[%s1721_s5 + $0x18] sm:$0xff]  ;;  %v378_v9 = vld [vmem:[%s1721_s5 + $0x20] sm:$0xff] }
  0x28   :  { %1138 = vmatprep.mubr.msk.f32.mxu1 %vm391_vm1, %v374_v5  ;;  %v379_v10 = vld [vmem:[%s1721_s5 + $0x28] sm:$0xff]  ;;  %v380_v11 = vld [vmem:[%s1721_s5 + $0x30] sm:$0xff]  ;;  %v381_v12 = vld [vmem:[%s1721_s5 + $0x38] sm:$0xff] }
  0x29   :  { %1139 = vmatmul.mubr.msk.f32.vlgmr.msra.gmra.mrb[0].mxu1 %vm391_vm1, %v375_v6  ;;  %v382_v13 = vld [vmem:[%s1721_s5 + $0x40] sm:$0xff]  ;;  %v383_v14 = vld [vmem:[%s1721_s5 + $0x48] sm:$0xff]  ;;  %v384_v15 = vld [vmem:[%s1721_s5 + $0x50] sm:$0xff] }
  0x2a   :  { %881 = vperm.xlu1 %1289, %v859_v40   ;;  %1141 = vmatprep.mubr.msk.f32.mxu1 %vm391_vm1, %v376_v7  ;;  %v385_v16 = vld [vmem:[%s1721_s5 + $0x58] sm:$0xff]  ;;  %v386_v17 = vld [vmem:[%s1721_s5 + $0x60] sm:$0xff]  ;;  %v387_v18 = vld [vmem:[%s1721_s5 + $0x68] sm:$0xff] }
  0x2b   :  { %876 = vperm.xlu0 %1288, %v858_v41   ;;  %v388_v19 = vld [vmem:[%s1721_s5 + $0x70] sm:$0xff]  ;;  %v389_v20 = vld [vmem:[%s1721_s5 + $0x78] sm:$0xff]  ;;  %v358_v21 = vld [vmem:[%s1720_s4] sm:$0xff] }
  0x2c   :  { %v364_v22 = vld [vmem:[%s1720_s4 + $0x30] sm:$0xff]  ;;  %1194 = vmatprep.mubr.f32.mxu0 %v358_v21 }
  0x2d   :  { %1142 = vmatmul.mubr.msk.f32.gmra.mrb[2].mxu1 %vm391_vm1, %v377_v8 }
  0x2e   :  { %886 = vperm.xlu1 %1289, %v860_v42   ;;  %1144 = vmatprep.mubr.msk.f32.mxu1 %vm391_vm1, %v378_v9 }
  0x2f   :  { %768 = vperm.xlu0 %1288, %v734_v43  }
  0x31   :  { %1145 = vmatmul.mubr.msk.f32.gmra.mrb[4].mxu1 %vm391_vm1, %v379_v10 }
  0x32   :  { %891 = vperm.xlu1 %1289, %v861_v44   ;;  %1147 = vmatprep.mubr.msk.f32.mxu1 %vm391_vm1, %v380_v11 }
  0x33   :  { %773 = vperm.xlu0 %1288, %v735_v45  }
  0x35   :  { %1148 = vmatmul.mubr.msk.f32.gmra.mrb[6].mxu1 %vm391_vm1, %v381_v12 }
  0x36   :  { %896 = vperm.xlu1 %1289, %v862_v46   ;;  %1150 = vmatprep.mubr.msk.f32.mxu1 %vm391_vm1, %v382_v13 }
  0x37   :  { %778 = vperm.xlu0 %1288, %v736_v47  }
  0x39   :  { %1151 = vmatmul.mubr.msk.f32.gmra.mrb[8].mxu1 %vm391_vm1, %v383_v14 }
  0x3a   :  { %901 = vperm.xlu1 %1289, %v863_v48   ;;  %1153 = vmatprep.mubr.msk.f32.mxu1 %vm391_vm1, %v384_v15 }
  0x3b   :  { %783 = vperm.xlu0 %1288, %v737_v49  }
  0x3d   :  { %1154 = vmatmul.mubr.msk.f32.gmra.mrb[10].mxu1 %vm391_vm1, %v385_v16 }
  0x3e   :  { %906 = vperm.xlu1 %1289, %v864_v50   ;;  %1156 = vmatprep.mubr.msk.f32.mxu1 %vm391_vm1, %v386_v17 }
  0x3f   :  { %788 = vperm.xlu0 %1288, %v738_v51  }
  0x41   :  { %1157 = vmatmul.mubr.msk.f32.gmra.mrb[12].mxu1 %vm391_vm1, %v387_v18 }
  0x42   :  { %911 = vperm.xlu1 %1289, %v865_v52   ;;  %1159 = vmatprep.mubr.msk.f32.mxu1 %vm391_vm1, %v388_v19 }
  0x43   :  { %793 = vperm.xlu0 %1288, %v739_v53  }
  0x45   :  { %1160 = vmatmul.mubr.msk.f32.gmra.mrb[14].mxu1 %vm391_vm1, %v389_v20 }
  0x46   :  { %916 = vperm.xlu1 %1289, %v866_v54   ;;  %1203 = vmatprep.mubr.f32.mxu1 %v364_v22 }
  0x47   :  { %798 = vperm.xlu0 %1288, %v740_v55  }
  0x4a   :  { %921 = vperm.xlu1 %1289, %v867_v56  }
  0x4b   :  { %803 = vperm.xlu0 %1288, %v741_v57  }
  0x4e   :  { %926 = vperm.xlu1 %1289, %v868_v58  }
  0x4f   :  { %808 = vperm.xlu0 %1288, %v742_v59  }
  0x52   :  { %931 = vperm.xlu1 %1289, %v869_v60  }
  0x53   :  { %813 = vperm.xlu0 %1288, %v743_v61  }
  0x56   :  { %936 = vperm.xlu1 %1289, %v870_v62  }
  0x57   :  { %818 = vperm.xlu0 %1288, %v744_v63  }
  0x5a   :  { %941 = vperm.xlu1 %1289, %v871_v0  }
  0x5b   :  { %823 = vperm.xlu0 %1288, %v745_v1  }
  0x5e   :  { %951 = vperm.xlu1 %1289, %v873_v2  }
  0x5f   :  { %946 = vperm.xlu0 %1288, %v872_v3  }
  0x81   :  { %v81_v23 = vpop.permute.xlu1 %80  ;;  %v71_v24 = vpop.permute.xlu0 %70 }
  0x85   :  { %v86_v25 = vpop.permute.xlu1 %85 }
  0x86   :  { %v76_v26 = vpop.permute.xlu0 %75 }
  0x89   :  { %v96_v27 = vpop.permute.xlu1 %95 }
  0x8a   :  { %v91_v28 = vpop.permute.xlu0 %90 }
  0x8d   :  { %v106_v34 = vpop.permute.xlu1 %105 }
  0x8e   :  { %v101_v37 = vpop.permute.xlu0 %100 }
  0x91   :  { %v116_v47 = vpop.permute.xlu1 %115 }
  0x92   :  { %v111_v50 = vpop.permute.xlu0 %110 }
  0x95   :  { %v126_v59 = vpop.permute.xlu1 %125 }
  0x96   :  { %v121_v62 = vpop.permute.xlu0 %120 }
  0x99   :  { %v136_v8 = vpop.permute.xlu1 %135 }
  0x9a   :  { %v131_v11 = vpop.permute.xlu0 %130 }
  0x9d   :  { %v146_v20 = vpop.permute.xlu1 %145 }
  0xdc   :  { %v1114_v29 = vpop.f32.mrb[0].mxu0 }
  0xdd   :  { %v269_v30 = vadd.f32 %v1114_v29, %v76_v26  ;;  %v263_v31 = vpop.f32.mrb[1].mxu0 }
  0xde   :  { %v264_v32 = vadd.f32 %v263_v31, %v71_v24  ;;  %v359_v31 = vld [vmem:[%s1720_s4 + $0x8] sm:$0xff] }
  0xdf   :  { %v343_v33 = vmax.f32 %v269_v30, 0.0 }
  0xe0   :  { %v342_v35 = vmax.f32 %v264_v32, 0.0  ;;  %v1117_v36 = vpop.f32.mrb[2].mxu0  ;;  %v365_v32 = vld [vmem:[%s1720_s4 + $0x38] sm:$0xff] }
  0xe1   :  { %v279_v38 = vadd.f32 %v1117_v36, %v86_v25  ;;  %v273_v39 = vpop.f32.mrb[3].mxu0  ;;  %v367_v36 = vld [vmem:[%s1720_s4 + $0x48] sm:$0xff] }
  0xe2   :  { %v1222_v40 = vpack.c.bf16 %v343_v33, %v342_v35  ;;  %v274_v41 = vadd.f32 %v273_v39, %v81_v23  ;;  %v141_v23 = vpop.permute.xlu0 %140  ;;  %v360_v33 = vld [vmem:[%s1720_s4 + $0x10] sm:$0xff]  ;;  %v361_v35 = vld [vmem:[%s1720_s4 + $0x18] sm:$0xff]  ;;  %v363_v39 = vld [vmem:[%s1720_s4 + $0x28] sm:$0xff] }
  0xe3   :  { %v345_v42 = vmax.f32 %v279_v38, 0.0  ;;  %v368_v38 = vld [vmem:[%s1720_s4 + $0x50] sm:$0xff] }
  0xe4   :  { %v344_v43 = vmax.f32 %v274_v41, 0.0  ;;  %v1120_v44 = vpop.f32.mrb[4].mxu0  ;;  %1223 = vmatprep.subr.bf16.mxu0 %v1222_v40  ;;  %1254 = vmatprep.subr.bf16.mxu1 %v1222_v40  ;;  %v370_v41 = vld [vmem:[%s1720_s4 + $0x60] sm:$0xff] }
  0xe5   :  { %v289_v45 = vadd.f32 %v1120_v44, %v96_v27  ;;  %v283_v46 = vpop.f32.mrb[5].mxu0  ;;  %1225 = vmatpush3.bf16.msra.mxu0 %v1222_v40  ;;  %1262 = vmatpush3.bf16.msra.mxu1 %v1222_v40  ;;  %v369_v40 = vld [vmem:[%s1720_s4 + $0x58] sm:$0xff] }
  0xe6   :  { %v1226_v48 = vpack.c.bf16 %v345_v42, %v344_v43  ;;  %v284_v49 = vadd.f32 %v283_v46, %v91_v28  ;;  %v371_v42 = vld [vmem:[%s1720_s4 + $0x68] sm:$0xff]  ;;  %v372_v43 = vld [vmem:[%s1720_s4 + $0x70] sm:$0xff]  ;;  %v373_v44 = vld [vmem:[%s1720_s4 + $0x78] sm:$0xff] }
  0xe7   :  { %v347_v51 = vmax.f32 %v289_v45, 0.0 }
  0xe8   :  { %v346_v52 = vmax.f32 %v284_v49, 0.0  ;;  %v1123_v53 = vpop.f32.mrb[6].mxu0  ;;  %1227 = vmatprep.subr.bf16.mxu0 %v1226_v48  ;;  %1255 = vmatprep.subr.bf16.mxu1 %v1226_v48 }
  0xe9   :  { %v299_v54 = vadd.f32 %v1123_v53, %v106_v34  ;;  %v293_v55 = vpop.f32.mrb[7].mxu0  ;;  %1229 = vmatpush3.bf16.msra.mxu0 %v1226_v48  ;;  %1263 = vmatpush3.bf16.msra.mxu1 %v1226_v48  ;;  %v366_v34 = vld [vmem:[%s1720_s4 + $0x40] sm:$0xff] }
  0xea   :  { %v1230_v56 = vpack.c.bf16 %v347_v51, %v346_v52  ;;  %v294_v57 = vadd.f32 %v293_v55, %v101_v37  ;;  %v362_v37 = vld [vmem:[%s1720_s4 + $0x20] sm:$0xff]  ;;  %v749_v51 = vpop.permute.xlu0 %748  ;;  %v754_v52 = vpop.permute.xlu1 %753 }
  0xeb   :  { %v349_v58 = vmax.f32 %v299_v54, 0.0 }
  0xec   :  { %v348_v60 = vmax.f32 %v294_v57, 0.0  ;;  %v1126_v61 = vpop.f32.mrb[8].mxu0  ;;  %1231 = vmatprep.subr.bf16.mxu0 %v1230_v56  ;;  %1256 = vmatprep.subr.bf16.mxu1 %v1230_v56 }
  0xed   :  { %v309_v63 = vadd.f32 %v1126_v61, %v116_v47  ;;  %v303_v0 = vpop.f32.mrb[9].mxu0  ;;  %1233 = vmatpush3.bf16.msra.mxu0 %v1230_v56  ;;  %1264 = vmatpush3.bf16.msra.mxu1 %v1230_v56 }
  0xee   :  { %v1234_v1 = vpack.c.bf16 %v349_v58, %v348_v60  ;;  %v304_v2 = vadd.f32 %v303_v0, %v111_v50  ;;  %v759_v53 = vpop.permute.xlu0 %758  ;;  %v764_v54 = vpop.permute.xlu1 %763 }
  0xef   :  { %v351_v3 = vmax.f32 %v309_v63, 0.0 }
  0xf0   :  { %v350_v4 = vmax.f32 %v304_v2, 0.0  ;;  %v1129_v5 = vpop.f32.mrb[10].mxu0  ;;  %1235 = vmatprep.subr.bf16.mxu0 %v1234_v1  ;;  %1257 = vmatprep.subr.bf16.mxu1 %v1234_v1 }
  0xf1   :  { %v319_v6 = vadd.f32 %v1129_v5, %v126_v59  ;;  %v313_v7 = vpop.f32.mrb[11].mxu0  ;;  %1237 = vmatpush3.bf16.msra.mxu0 %v1234_v1  ;;  %1265 = vmatpush3.bf16.msra.mxu1 %v1234_v1 }
  0xf2   :  { %v1238_v9 = vpack.c.bf16 %v351_v3, %v350_v4  ;;  %v314_v10 = vadd.f32 %v313_v7, %v121_v62  ;;  %v877_v55 = vpop.permute.xlu0 %876  ;;  %v882_v56 = vpop.permute.xlu1 %881 }
  0xf3   :  { %v353_v12 = vmax.f32 %v319_v6, 0.0 }
  0xf4   :  { %v352_v13 = vmax.f32 %v314_v10, 0.0  ;;  %v1132_v14 = vpop.f32.mrb[12].mxu0  ;;  %1239 = vmatprep.subr.bf16.mxu0 %v1238_v9  ;;  %1258 = vmatprep.subr.bf16.mxu1 %v1238_v9 }
  0xf5   :  { %v329_v15 = vadd.f32 %v1132_v14, %v136_v8  ;;  %v323_v16 = vpop.f32.mrb[13].mxu0  ;;  %1241 = vmatpush3.bf16.msra.mxu0 %v1238_v9  ;;  %1266 = vmatpush3.bf16.msra.mxu1 %v1238_v9 }
  0xf6   :  { %v1242_v17 = vpack.c.bf16 %v353_v12, %v352_v13  ;;  %v324_v18 = vadd.f32 %v323_v16, %v131_v11  ;;  %v769_v57 = vpop.permute.xlu0 %768  ;;  %v887_v58 = vpop.permute.xlu1 %886 }
  0xf7   :  { %v355_v19 = vmax.f32 %v329_v15, 0.0 }
  0xf8   :  { %v354_v21 = vmax.f32 %v324_v18, 0.0  ;;  %v1135_v22 = vpop.f32.mrb[14].mxu0  ;;  %1243 = vmatprep.subr.bf16.mxu0 %v1242_v17  ;;  %1259 = vmatprep.subr.bf16.mxu1 %v1242_v17 }
  0xf9   :  { %v339_v24 = vadd.f32 %v1135_v22, %v146_v20  ;;  %v333_v25 = vpop.f32.mrb[15].mxu0  ;;  %1245 = vmatpush3.bf16.msra.mxu0 %v1242_v17  ;;  %1267 = vmatpush3.bf16.msra.mxu1 %v1242_v17 }
  0xfa   :  { %v1246_v26 = vpack.c.bf16 %v355_v19, %v354_v21  ;;  %v334_v27 = vadd.f32 %v333_v25, %v141_v23  ;;  %v774_v59 = vpop.permute.xlu0 %773  ;;  %v892_v60 = vpop.permute.xlu1 %891 }
  0xfb   :  { %v357_v28 = vmax.f32 %v339_v24, 0.0 }
  0xfc   :  { %v356_v29 = vmax.f32 %v334_v27, 0.0  ;;  %1247 = vmatprep.subr.bf16.mxu0 %v1246_v26  ;;  %1260 = vmatprep.subr.bf16.mxu1 %v1246_v26  ;;  %v1140_v45 = vpop.f32.mrb[0].mxu1 }
  0xfd   :  { %1249 = vmatpush3.bf16.msra.mxu0 %v1246_v26  ;;  %1268 = vmatpush3.bf16.msra.mxu1 %v1246_v26  ;;  %v506_v46 = vpop.f32.mrb[1].mxu1 }
  0xfe   :  { %v1250_v30 = vpack.c.bf16 %v357_v28, %v356_v29  ;;  %v779_v61 = vpop.permute.xlu0 %778  ;;  %v897_v62 = vpop.permute.xlu1 %896 }
 0x100   :  { %1251 = vmatprep.subr.bf16.mxu0 %v1250_v30  ;;  %1261 = vmatprep.subr.bf16.mxu1 %v1250_v30  ;;  %v1143_v47 = vpop.f32.mrb[2].mxu1 }
 0x101   :  { %1253 = vmatpush3.bf16.msra.mxu0 %v1250_v30  ;;  %1269 = vmatpush3.bf16.msra.mxu1 %v1250_v30  ;;  %v516_v48 = vpop.f32.mrb[3].mxu1 }
 0x102   :  { %v784_v63 = vpop.permute.xlu0 %783  ;;  %v902_v0 = vpop.permute.xlu1 %901 }
 0x104   :  { %1195 = vmatmul.mubr.f32.vlgmr.msra.gmra.mrb[16].mxu0 %v359_v31  ;;  %1204 = vmatmul.mubr.f32.vlgmr.msra.gmra.mrb[6].mxu1 %v365_v32  ;;  %v1146_v49 = vpop.f32.mrb[4].mxu1 }
 0x105   :  { %1197 = vmatprep.mubr.f32.mxu0 %v360_v33  ;;  %1206 = vmatprep.mubr.f32.mxu1 %v366_v34  ;;  %v526_v50 = vpop.f32.mrb[5].mxu1 }
 0x106   :  { %v789_v1 = vpop.permute.xlu0 %788  ;;  %v907_v2 = vpop.permute.xlu1 %906 }
 0x108   :  { %1198 = vmatmul.mubr.f32.gmra.mrb[18].mxu0 %v361_v35  ;;  %1207 = vmatmul.mubr.f32.gmra.mrb[8].mxu1 %v367_v36 }
 0x109   :  { %1200 = vmatprep.mubr.f32.mxu0 %v362_v37  ;;  %1209 = vmatprep.mubr.f32.mxu1 %v368_v38 }
 0x10a   :  { %v794_v3 = vpop.permute.xlu0 %793  ;;  %v1695_v4 = vpop.permute.xlu1 %911 }
 0x10c   :  { %1201 = vmatmul.mubr.f32.gmra.mrb[20].mxu0 %v363_v39  ;;  %1210 = vmatmul.mubr.f32.gmra.mrb[10].mxu1 %v369_v40 }
 0x10d   :  { %1212 = vmatprep.mubr.f32.mxu1 %v370_v41 }
 0x10e   :  { %v799_v5 = vpop.permute.xlu0 %798  ;;  %v1697_v6 = vpop.permute.xlu1 %916 }
 0x110   :  { %1213 = vmatmul.mubr.f32.gmra.mrb[12].mxu1 %v371_v42 }
 0x111   :  { %1215 = vmatprep.mubr.f32.mxu1 %v372_v43 }
 0x112   :  { %v804_v13 = vpop.permute.xlu0 %803  ;;  %v922_v24 = vpop.permute.xlu1 %921 }
 0x114   :  { %1216 = vmatmul.mubr.f32.gmra.mrb[14].mxu1 %v373_v44 }
 0x116   :  { %v809_v38 = vpop.permute.xlu0 %808  ;;  %v927_v44 = vpop.permute.xlu1 %926 }
 0x1d7   :  { %v1196_v7 = vpop.f32.mrb[16].mxu0  ;;  %v1205_v8 = vpop.f32.mrb[6].mxu1 }
 0x1d8   :  { %v657_v9 = vadd.f32 %v1196_v7, %v1140_v45  ;;  %v651_v10 = vpop.f32.mrb[17].mxu0  ;;  %v681_v11 = vpop.f32.mrb[7].mxu1  ;;  %v833_v45 = vadd.f32 %v1205_v8, %v784_v63 }
 0x1d9   :  { %v652_v12 = vadd.f32 %v651_v10, %v506_v46  ;;  %v832_v40 = vadd.f32 %v779_v61, %v681_v11  ;;  %v814_v7 = vpop.permute.xlu0 %813 }
 0x1da   :  { %v827_v14 = vadd.f32 %v754_v52, %v657_v9  ;;  %v849_v9 = vmax.f32 %v833_v45, 0.0  ;;  %v992_v45 = vstv %s1724_s8 }
 0x1db   :  { %v826_v15 = vadd.f32 %v749_v51, %v652_v12  ;;  %v1199_v16 = vpop.f32.mrb[18].mxu0  ;;  %v1208_v17 = vpop.f32.mrb[8].mxu1 }
 0x1dc   :  { %v843_v18 = vmax.f32 %v827_v14, 0.0  ;;  %v667_v19 = vadd.f32 %v1199_v16, %v1143_v47  ;;  %v661_v20 = vpop.f32.mrb[19].mxu0  ;;  %v691_v21 = vpop.f32.mrb[9].mxu1 }
 0x1dd   :  { %v842_v22 = vmax.f32 %v826_v15, 0.0  ;;  %v662_v23 = vadd.f32 %v661_v20, %v516_v48 }
 0x1de   :  { %v955_v25 = vmul.f32 %v882_v56, %v843_v18  ;;  %v829_v26 = vadd.f32 %v764_v54, %v667_v19 }
 0x1df   :  { %v954_v27 = vmul.f32 %v877_v55, %v842_v22  ;;  %v828_v28 = vadd.f32 %v759_v53, %v662_v23  ;;  %v1202_v29 = vpop.f32.mrb[20].mxu0  ;;  %v1211_v30 = vpop.f32.mrb[10].mxu1  ;;  %v834_v53 = vadd.f32 %v789_v1, %v691_v21 }
 0x1e0   :  { %v677_v31 = vadd.f32 %v1202_v29, %v1146_v49  ;;  %v671_v32 = vpop.f32.mrb[21].mxu0  ;;  %v701_v33 = vpop.f32.mrb[11].mxu1  ;;  %v845_v35 = vmax.f32 %v829_v26, 0.0  ;;  %v848_v49 = vmax.f32 %v832_v40, 0.0  ;;  %v837_v14 = vadd.f32 %v1211_v30, %v804_v13 }
 0x1e1   :  { %v970_v34 = vadd.f32 %v955_v25, %v954_v27  ;;  %v844_v36 = vmax.f32 %v828_v28, 0.0  ;;  %v672_v37 = vadd.f32 %v671_v32, %v526_v50  ;;  %v850_v11 = vmax.f32 %v834_v53, 0.0  ;;  %v819_v1 = vpop.permute.xlu0 %818 }
 0x1e2   :  { %v831_v39 = vadd.f32 %v774_v59, %v677_v31  ;;  %v957_v47 = vmul.f32 %v892_v60, %v845_v35  ;;  %v835_v59 = vadd.f32 %v1208_v17, %v794_v3  ;;  %v960_v10 = vmul.f32 %v907_v2, %v848_v49 }
 0x1e3   :  { %v956_v41 = vmul.f32 %v887_v58, %v844_v36  ;;  %v830_v42 = vadd.f32 %v769_v57, %v672_v37  ;;  %v1214_v43 = vpop.f32.mrb[12].mxu1  ;;  %v932_v57 = vpop.permute.xlu1 %931  ;;  %v836_v8 = vadd.f32 %v799_v5, %v701_v33  ;;  %v961_v60 = vmul.f32 %v1695_v4, %v849_v9 }
 0x1e4   :  { %v711_v46 = vpop.f32.mrb[13].mxu1  ;;  %v847_v51 = vmax.f32 %v831_v39, 0.0  ;;  %v851_v12 = vmax.f32 %v835_v59, 0.0  ;;  %v839_v21 = vadd.f32 %v1214_v43, %v814_v7 }
 0x1e5   :  { %v971_v48 = vadd.f32 %v970_v34, %v956_v41  ;;  %v846_v52 = vmax.f32 %v830_v42, 0.0  ;;  %v852_v16 = vmax.f32 %v836_v8, 0.0  ;;  %v838_v19 = vadd.f32 %v809_v38, %v711_v46  ;;  %v824_v25 = vpop.permute.xlu0 %823 }
 0x1e6   :  { %v959_v61 = vmul.f32 %v902_v0, %v847_v51  ;;  %v963_v3 = vmul.f32 %v922_v24, %v851_v12  ;;  %v853_v0 = vmax.f32 %v837_v14, 0.0  ;;  %v855_v13 = vmax.f32 %v839_v21, 0.0 }
 0x1e7   :  { %v958_v54 = vmul.f32 %v897_v62, %v846_v52  ;;  %v972_v55 = vadd.f32 %v971_v48, %v957_v47  ;;  %v1217_v56 = vpop.f32.mrb[14].mxu1  ;;  %v962_v62 = vmul.f32 %v1697_v6, %v850_v11  ;;  %v937_v20 = vpop.permute.xlu1 %936  ;;  %v964_v2 = vmul.f32 %v927_v44, %v852_v16 }
 0x1e8   :  { %v721_v50 = vpop.f32.mrb[15].mxu1  ;;  %v854_v23 = vmax.f32 %v838_v19, 0.0  ;;  %v965_v4 = vmul.f32 %v932_v57, %v853_v0  ;;  %v841_v27 = vadd.f32 %v1217_v56, %v824_v25 }
 0x1e9   :  { %v973_v58 = vadd.f32 %v972_v55, %v958_v54  ;;  %v840_v5 = vadd.f32 %v819_v1, %v721_v50  ;;  %v947_v24 = vpop.permute.xlu0 %946 }
 0x1ea   :  { %v966_v29 = vmul.f32 %v937_v20, %v854_v23  ;;  %v857_v33 = vmax.f32 %v841_v27, 0.0 }
 0x1eb   :  { %v974_v63 = vadd.f32 %v973_v58, %v959_v61  ;;  %v942_v28 = vpop.permute.xlu1 %941  ;;  %v856_v30 = vmax.f32 %v840_v5, 0.0 }
 0x1ec   :  { %v967_v31 = vmul.f32 %v942_v28, %v855_v13 }
 0x1ed   :  { %v975_v15 = vadd.f32 %v974_v63, %v960_v10  ;;  %v968_v34 = vmul.f32 %v947_v24, %v856_v30 }
 0x1ef   :  { %v976_v18 = vadd.f32 %v975_v15, %v961_v60  ;;  %v952_v36 = vpop.permute.xlu1 %951 }
 0x1f0   :  { %v969_v37 = vmul.f32 %v952_v36, %v857_v33 }
 0x1f1   :  { %v977_v17 = vadd.f32 %v976_v18, %v962_v62 }
 0x1f3   :  { %v978_v22 = vadd.f32 %v977_v17, %v963_v3 }
 0x1f5   :  { %v979_v26 = vadd.f32 %v978_v22, %v964_v2 }
 0x1f7   :  { %v980_v6 = vadd.f32 %v979_v26, %v965_v4 }
 0x1f9   :  { %v981_v32 = vadd.f32 %v980_v6, %v966_v29 }
 0x1fb   :  { %v982_v35 = vadd.f32 %v981_v32, %v967_v31 }
 0x1fd   :  { %v983_v38 = vadd.f32 %v982_v35, %v968_v34 }
 0x1ff   :  { %v984_v39 = vadd.f32 %v983_v38, %v969_v37 }
 0x201   :  { %v985_v40 = vrot.slane %v984_v39, 4 }
 0x203   :  { %v986_v41 = vadd.f32 %v985_v40, %v984_v39 }
 0x205   :  { %v987_v42 = vrot.slane %v986_v41, 2 }
 0x207   :  { %v988_v43 = vadd.f32 %v987_v42, %v986_v41 }
 0x209   :  { %v989_v44 = vrot.slane %v988_v43, 1 }
 0x20b   :  { %v990_v46 = vadd.f32 %v989_v44, %v988_v43 }
 0x20d   :  { %v993_v47 = vadd.f32 %v992_v45, %v990_v46 }
 0x20f   :  { %994 = vst [vmem:[#allocation3] sm:$0x1] %v993_v47 }
 0x210   :  { %1301 = shalt.err (!%p1298_p4)
}
 0x211   :  { %s1302_s16 = scalar_lea.hbm %s1725_s9, 16 }
 0x212   :  { %p1303_p5 = scmp.ne.s32.totalorder %s1725_s9, %s1302_s16  ;;  %p1306_p6 = scmp.lt.u32.totalorder %s1302_s16, %s1725_s9 }
 0x214   :  { %p1308_p7 = pnand %p1306_p6, %p1303_p5 }
 0x216   :  { %1311 = shalt.err (!%p1308_p7)
}
 0x217   :  { %1004 = dma.vmem_to_hbm [thread:$0]  %s1002_s3, 16, %s1725_s9, [#allocation4]  }
 0x218   :  { %1312 = dma.done.wait [#allocation4], 16  }
 0x219   :  { %1313 = vsyncadd [#allocation4], 4294967280 }
 0x21a   :  { %1008 = vsyncpa [#allocation4], 1 }

</bundles_post_ra>
